<compile_context>
chip_gen: v7x
topology: tpu7x:2x2x1
jax: 0.10.0
libtpu: 0.0.40
codegen_flags: <defaults>
</compile_context>

<pallas_src>
import functools

import numpy as np

import jax
import jax.numpy as jnp
from jax.experimental import pallas as pl
from jax.experimental.pallas import tpu as pltpu


def _tensorcores_per_chip():
    """Best-effort TC-per-chip detection (v5e/v6e = 1, v7x = 2)."""
    try:
        kind = jax.devices()[0].device_kind.lower()
    except Exception:  # pragma: no cover - be conservative if query fails
        return 1
    return 2 if "v7" in kind else 1


def _halo_masks(H, W):
    """(9, H*W) f32 validity masks for the 3x3 taps, built at trace time."""
    HW = H * W
    hs, ws = np.divmod(np.arange(HW, dtype=np.int64), W)
    m = np.zeros((9, HW), np.float32)
    for kh in range(3):
        for kw in range(3):
            dh, dw = kh - 1, kw - 1
            valid = ((hs + dh >= 0) & (hs + dh < H) &
                     (ws + dw >= 0) & (ws + dw < W))
            m[kh * 3 + kw] = valid.astype(np.float32)
    return jnp.asarray(m)


def _conv_relu_kernel(x_ref, w_ref, b_ref, m_ref, o_ref, *, H, W, n_block):
    # x_ref: (n_block, cin_p, HW)  cin_p = Cin rounded up to 8 (sublane aligned)
    # w_ref: (Cout, 9*cin_p)       column = (kh*3+kw)*cin_p + ci (zeros ci>=Cin)
    # b_ref: (Cout, 1)
    # m_ref: (9, HW)               halo masks (1.0 = valid, 0.0 = padding)
    # o_ref: (n_block, Cout, HW)   lane-dense output tiles
    HW = H * W
    w = w_ref[...]
    b = b_ref[...]

    for n in range(n_block):                       # static unroll, n_block in {1, 2}
        x = x_ref[n]                               # (cin_p, HW)
        taps = []
        for kh in range(3):
            for kw in range(3):
                delta = (kh - 1) * W + (kw - 1)    # flat-index offset of this tap
                if delta == 0:
                    taps.append(x)                 # center tap: no roll, no mask
                else:
                    # shifted[ci, s] = x[ci, (s + delta) mod HW]; every wrapped or
                    # out-of-image lane is zeroed by the precomputed mask.
                    shifted = pltpu.roll(x, shift=(-delta) % HW, axis=1)
                    taps.append(shifted * m_ref[pl.ds(kh * 3 + kw, 1), :])
        # All chunks are (cin_p=8, HW): 8-sublane-aligned concat, no retiling.
        p = jnp.concatenate(taps, axis=0)                          # (9*cin_p, HW)
        # Single MXU matmul per image, f32 accumulation.
        acc = jnp.dot(w, p, preferred_element_type=jnp.float32)    # (Cout, HW)
        o_ref[n] = jnp.maximum(acc + b, 0.0).astype(o_ref.dtype)


def conv_relu(x_nchw, weight_oihw, bias, *, images_per_step=None):
    """Forward pass of ConvRelu. x_nchw: (N, Cin, H, W). Returns (N, Cout, H, W)."""
    N, Cin, H, W = x_nchw.shape
    Cout = weight_oihw.shape[0]
    HW = H * W
    cin_p = ((Cin + 7) // 8) * 8                    # sublane-aligned channel count

    # Generation-aware grid shaping (see header).  If N is not divisible by the
    # core count we fall back to a single step.
    # TODO(synk): for N==1 on dual-TC parts, split the spatial axis instead.
    if images_per_step is None:
        cores = _tensorcores_per_chip()
        if cores > 1 and N % cores == 0:
            images_per_step = N // cores            # e.g. v7x: 1 image per core
        else:
            images_per_step = N                     # v5e / v6e: one grid step
    assert N % images_per_step == 0
    grid = (N // images_per_step,)

    # Free contiguous-dim merge + tiny channel pad to the sublane multiple.
    x_flat = x_nchw.reshape(N, Cin, HW)
    if cin_p > Cin:
        x_flat = jnp.pad(x_flat, ((0, 0), (0, cin_p - Cin), (0, 0)))

    # Weights: (Cout, Cin, 3, 3) -> (Cout, 9*cin_p); column (kh*3+kw)*cin_p + ci,
    # zero-filled for padded channels (matches the zero rows of the input taps).
    w_k_ci = jnp.transpose(weight_oihw, (0, 2, 3, 1)).reshape(Cout, 9, Cin)
    w2 = jnp.zeros((Cout, 9, cin_p), weight_oihw.dtype).at[:, :, :Cin].set(w_k_ci)
    w2 = w2.reshape(Cout, 9 * cin_p)
    b2 = bias.reshape(Cout, 1)
    masks = _halo_masks(H, W)                       # (9, HW), trace-time constants

    kernel = functools.partial(_conv_relu_kernel, H=H, W=W, n_block=images_per_step)

    out_flat = pl.pallas_call(
        kernel,
        out_shape=jax.ShapeDtypeStruct((N, Cout, HW), x_nchw.dtype),
        grid_spec=pltpu.PrefetchScalarGridSpec(
            num_scalar_prefetch=0,
            grid=grid,
            in_specs=[
                pl.BlockSpec((images_per_step, cin_p, HW), lambda g: (g, 0, 0)),
                pl.BlockSpec((Cout, 9 * cin_p), lambda g: (0, 0)),
                pl.BlockSpec((Cout, 1), lambda g: (0, 0)),
                pl.BlockSpec((9, HW), lambda g: (0, 0)),
            ],
            out_specs=pl.BlockSpec((images_per_step, Cout, HW),
                                   lambda g: (g, 0, 0)),
        ),
        compiler_params=pltpu.CompilerParams(
            dimension_semantics=("parallel",)),
    )(x_flat, w2, b2, masks)

    return out_flat.reshape(N, Cout, H, W)


def _reference(x_nchw, weight_oihw, bias):
    out = jax.lax.conv_general_dilated(
        x_nchw, weight_oihw, window_strides=(1, 1), padding=((1, 1), (1, 1)),
        dimension_numbers=("NCHW", "OIHW", "NCHW"))
    out = out + bias.reshape(1, -1, 1, 1)
    return jnp.maximum(out, 0.0)


if __name__ == "__main__":
    # Small shapes consistent with ConvRelu(in_=4, out=8): x is (N=2, Cin=4, 16, 16)
    N, Cin, Cout, H, W = 2, 4, 8, 16, 16

    key = jax.random.PRNGKey(0)
    kx, kw, kb = jax.random.split(key, 3)

    x = jax.random.normal(kx, (N, Cin, H, W), dtype=jnp.float32)
    # Deterministic param init (shapes from nn.Conv2d(in_, out, 3, padding=1)):
    fan_in = Cin * 3 * 3
    bound = 1.0 / (fan_in ** 0.5)
    weight = jax.random.uniform(kw, (Cout, Cin, 3, 3), jnp.float32, -bound, bound)
    bias = jax.random.uniform(kb, (Cout,), jnp.float32, -bound, bound)

    out = conv_relu(x, weight, bias)
    out = jax.block_until_ready(out)

    ref = _reference(x, weight, bias)
    assert out.shape == (N, Cout, H, W)
    assert jnp.allclose(out, ref, atol=1e-4, rtol=1e-4)

    print("KERNEL_OK")
</pallas_src>

<mosaic_0001>
module attributes {stable_mosaic.version = 11 : i64} {
  func.func @_conv_relu_kernel(%arg0: i32, %arg1: memref<2x8x256xf32, #tpu.memory_space<vmem>>, %arg2: memref<8x72xf32, #tpu.memory_space<vmem>>, %arg3: memref<8x1xf32, #tpu.memory_space<vmem>>, %arg4: memref<9x256xf32, #tpu.memory_space<vmem>>, %arg5: memref<2x8x256xf32, #tpu.memory_space<vmem>>) attributes {dimension_semantics = [#tpu.dimension_semantics<parallel>], iteration_bounds = array<i64: 1>, scalar_prefetch = 0 : i64, scratch_operands = 0 : i64, tpu.core_type = #tpu.core_type<tc>, window_params = [{transform_indices = @transform_0, window_bounds = array<i64: 2, 8, 256>}, {pipeline_mode = #tpu.pipeline_mode<synchronous>, transform_indices = @transform_1, window_bounds = array<i64: 8, 72>}, {pipeline_mode = #tpu.pipeline_mode<synchronous>, transform_indices = @transform_2, window_bounds = array<i64: 8, 1>}, {pipeline_mode = #tpu.pipeline_mode<synchronous>, transform_indices = @transform_3, window_bounds = array<i64: 9, 256>}, {transform_indices = @transform_4, window_bounds = array<i64: 2, 8, 256>}]} {
    %c0 = arith.constant 0 : index
    %c0_0 = arith.constant 0 : index
    %0 = vector.load %arg2[%c0, %c0_0] : memref<8x72xf32, #tpu.memory_space<vmem>>, vector<8x72xf32>
    %c0_1 = arith.constant 0 : index
    %c0_2 = arith.constant 0 : index
    %1 = vector.load %arg3[%c0_1, %c0_2] : memref<8x1xf32, #tpu.memory_space<vmem>>, vector<8x1xf32>
    %c0_3 = arith.constant 0 : index
    %c0_4 = arith.constant 0 : index
    %c0_5 = arith.constant 0 : index
    %2 = vector.load %arg1[%c0_3, %c0_4, %c0_5] : memref<2x8x256xf32, #tpu.memory_space<vmem>>, vector<1x8x256xf32>
    %3 = vector.shape_cast %2 : vector<1x8x256xf32> to vector<8x256xf32>
    %c17_i32 = arith.constant 17 : i32
    %4 = tpu.dynamic_rotate %3 by %c17_i32 dim 1 : vector<8x256xf32>, i32 -> vector<8x256xf32>
    %c0_6 = arith.constant 0 : index
    %c0_7 = arith.constant 0 : index
    %5 = vector.load %arg4[%c0_6, %c0_7] : memref<9x256xf32, #tpu.memory_space<vmem>>, vector<1x256xf32>
    %6 = vector.broadcast %5 : vector<1x256xf32> to vector<8x256xf32>
    %7 = arith.mulf %4, %6 : vector<8x256xf32>
    %c16_i32 = arith.constant 16 : i32
    %8 = tpu.dynamic_rotate %3 by %c16_i32 dim 1 : vector<8x256xf32>, i32 -> vector<8x256xf32>
    %c1 = arith.constant 1 : index
    %c0_8 = arith.constant 0 : index
    %9 = vector.load %arg4[%c1, %c0_8] : memref<9x256xf32, #tpu.memory_space<vmem>>, vector<1x256xf32>
    %10 = vector.broadcast %9 : vector<1x256xf32> to vector<8x256xf32>
    %11 = arith.mulf %8, %10 : vector<8x256xf32>
    %c15_i32 = arith.constant 15 : i32
    %12 = tpu.dynamic_rotate %3 by %c15_i32 dim 1 : vector<8x256xf32>, i32 -> vector<8x256xf32>
    %c2 = arith.constant 2 : index
    %c0_9 = arith.constant 0 : index
    %13 = vector.load %arg4[%c2, %c0_9] : memref<9x256xf32, #tpu.memory_space<vmem>>, vector<1x256xf32>
    %14 = vector.broadcast %13 : vector<1x256xf32> to vector<8x256xf32>
    %15 = arith.mulf %12, %14 : vector<8x256xf32>
    %c1_i32 = arith.constant 1 : i32
    %16 = tpu.dynamic_rotate %3 by %c1_i32 dim 1 : vector<8x256xf32>, i32 -> vector<8x256xf32>
    %c3 = arith.constant 3 : index
    %c0_10 = arith.constant 0 : index
    %17 = vector.load %arg4[%c3, %c0_10] : memref<9x256xf32, #tpu.memory_space<vmem>>, vector<1x256xf32>
    %18 = vector.broadcast %17 : vector<1x256xf32> to vector<8x256xf32>
    %19 = arith.mulf %16, %18 : vector<8x256xf32>
    %c255_i32 = arith.constant 255 : i32
    %20 = tpu.dynamic_rotate %3 by %c255_i32 dim 1 : vector<8x256xf32>, i32 -> vector<8x256xf32>
    %c5 = arith.constant 5 : index
    %c0_11 = arith.constant 0 : index
    %21 = vector.load %arg4[%c5, %c0_11] : memref<9x256xf32, #tpu.memory_space<vmem>>, vector<1x256xf32>
    %22 = vector.broadcast %21 : vector<1x256xf32> to vector<8x256xf32>
    %23 = arith.mulf %20, %22 : vector<8x256xf32>
    %c241_i32 = arith.constant 241 : i32
    %24 = tpu.dynamic_rotate %3 by %c241_i32 dim 1 : vector<8x256xf32>, i32 -> vector<8x256xf32>
    %c6 = arith.constant 6 : index
    %c0_12 = arith.constant 0 : index
    %25 = vector.load %arg4[%c6, %c0_12] : memref<9x256xf32, #tpu.memory_space<vmem>>, vector<1x256xf32>
    %26 = vector.broadcast %25 : vector<1x256xf32> to vector<8x256xf32>
    %27 = arith.mulf %24, %26 : vector<8x256xf32>
    %c240_i32 = arith.constant 240 : i32
    %28 = tpu.dynamic_rotate %3 by %c240_i32 dim 1 : vector<8x256xf32>, i32 -> vector<8x256xf32>
    %c7 = arith.constant 7 : index
    %c0_13 = arith.constant 0 : index
    %29 = vector.load %arg4[%c7, %c0_13] : memref<9x256xf32, #tpu.memory_space<vmem>>, vector<1x256xf32>
    %30 = vector.broadcast %29 : vector<1x256xf32> to vector<8x256xf32>
    %31 = arith.mulf %28, %30 : vector<8x256xf32>
    %c239_i32 = arith.constant 239 : i32
    %32 = tpu.dynamic_rotate %3 by %c239_i32 dim 1 : vector<8x256xf32>, i32 -> vector<8x256xf32>
    %c8 = arith.constant 8 : index
    %c0_14 = arith.constant 0 : index
    %33 = vector.load %arg4[%c8, %c0_14] : memref<9x256xf32, #tpu.memory_space<vmem>>, vector<1x256xf32>
    %34 = vector.broadcast %33 : vector<1x256xf32> to vector<8x256xf32>
    %35 = arith.mulf %32, %34 : vector<8x256xf32>
    %36 = tpu.concatenate %7, %11, %15, %19, %3, %23, %27, %31, %35 in 0 : vector<8x256xf32>, vector<8x256xf32>, vector<8x256xf32>, vector<8x256xf32>, vector<8x256xf32>, vector<8x256xf32>, vector<8x256xf32>, vector<8x256xf32>, vector<8x256xf32> -> vector<72x256xf32>
    %cst = arith.constant dense<0.000000e+00> : vector<8x256xf32>
    %37 = tpu.matmul %0, %36, %cst {dimension_numbers = #tpu.dot_dimension_numbers<[1], [0], [0], [1], [0, 0, 1, 1], [], []>} : vector<8x72xf32>, vector<72x256xf32>, vector<8x256xf32> -> vector<8x256xf32>
    %38 = vector.broadcast %1 : vector<8x1xf32> to vector<8x256xf32>
    %39 = arith.addf %37, %38 : vector<8x256xf32>
    %cst_15 = arith.constant 0.000000e+00 : f32
    %40 = vector.broadcast %cst_15 : f32 to vector<8x256xf32>
    %41 = arith.maximumf %39, %40 : vector<8x256xf32>
    %c0_16 = arith.constant 0 : index
    %c0_17 = arith.constant 0 : index
    %c0_18 = arith.constant 0 : index
    %42 = vector.load %arg5[%c0_16, %c0_17, %c0_18] : memref<2x8x256xf32, #tpu.memory_space<vmem>>, vector<1x8x256xf32>
    %43 = vector.shape_cast %42 : vector<1x8x256xf32> to vector<8x256xf32>
    %44 = vector.shape_cast %41 : vector<8x256xf32> to vector<1x8x256xf32>
    tpu.vector_store %arg5[%c0_16, %c0_17, %c0_18], %44 {strides = array<i32>} : memref<2x8x256xf32, #tpu.memory_space<vmem>>, vector<1x8x256xf32>,
    %c1_19 = arith.constant 1 : index
    %c0_20 = arith.constant 0 : index
    %c0_21 = arith.constant 0 : index
    %45 = vector.load %arg1[%c1_19, %c0_20, %c0_21] : memref<2x8x256xf32, #tpu.memory_space<vmem>>, vector<1x8x256xf32>
    %46 = vector.shape_cast %45 : vector<1x8x256xf32> to vector<8x256xf32>
    %c17_i32_22 = arith.constant 17 : i32
    %47 = tpu.dynamic_rotate %46 by %c17_i32_22 dim 1 : vector<8x256xf32>, i32 -> vector<8x256xf32>
    %c0_23 = arith.constant 0 : index
    %c0_24 = arith.constant 0 : index
    %48 = vector.load %arg4[%c0_23, %c0_24] : memref<9x256xf32, #tpu.memory_space<vmem>>, vector<1x256xf32>
    %49 = vector.broadcast %48 : vector<1x256xf32> to vector<8x256xf32>
    %50 = arith.mulf %47, %49 : vector<8x256xf32>
    %c16_i32_25 = arith.constant 16 : i32
    %51 = tpu.dynamic_rotate %46 by %c16_i32_25 dim 1 : vector<8x256xf32>, i32 -> vector<8x256xf32>
    %c1_26 = arith.constant 1 : index
    %c0_27 = arith.constant 0 : index
    %52 = vector.load %arg4[%c1_26, %c0_27] : memref<9x256xf32, #tpu.memory_space<vmem>>, vector<1x256xf32>
    %53 = vector.broadcast %52 : vector<1x256xf32> to vector<8x256xf32>
    %54 = arith.mulf %51, %53 : vector<8x256xf32>
    %c15_i32_28 = arith.constant 15 : i32
    %55 = tpu.dynamic_rotate %46 by %c15_i32_28 dim 1 : vector<8x256xf32>, i32 -> vector<8x256xf32>
    %c2_29 = arith.constant 2 : index
    %c0_30 = arith.constant 0 : index
    %56 = vector.load %arg4[%c2_29, %c0_30] : memref<9x256xf32, #tpu.memory_space<vmem>>, vector<1x256xf32>
    %57 = vector.broadcast %56 : vector<1x256xf32> to vector<8x256xf32>
    %58 = arith.mulf %55, %57 : vector<8x256xf32>
    %c1_i32_31 = arith.constant 1 : i32
    %59 = tpu.dynamic_rotate %46 by %c1_i32_31 dim 1 : vector<8x256xf32>, i32 -> vector<8x256xf32>
    %c3_32 = arith.constant 3 : index
    %c0_33 = arith.constant 0 : index
    %60 = vector.load %arg4[%c3_32, %c0_33] : memref<9x256xf32, #tpu.memory_space<vmem>>, vector<1x256xf32>
    %61 = vector.broadcast %60 : vector<1x256xf32> to vector<8x256xf32>
    %62 = arith.mulf %59, %61 : vector<8x256xf32>
    %c255_i32_34 = arith.constant 255 : i32
    %63 = tpu.dynamic_rotate %46 by %c255_i32_34 dim 1 : vector<8x256xf32>, i32 -> vector<8x256xf32>
    %c5_35 = arith.constant 5 : index
    %c0_36 = arith.constant 0 : index
    %64 = vector.load %arg4[%c5_35, %c0_36] : memref<9x256xf32, #tpu.memory_space<vmem>>, vector<1x256xf32>
    %65 = vector.broadcast %64 : vector<1x256xf32> to vector<8x256xf32>
    %66 = arith.mulf %63, %65 : vector<8x256xf32>
    %c241_i32_37 = arith.constant 241 : i32
    %67 = tpu.dynamic_rotate %46 by %c241_i32_37 dim 1 : vector<8x256xf32>, i32 -> vector<8x256xf32>
    %c6_38 = arith.constant 6 : index
    %c0_39 = arith.constant 0 : index
    %68 = vector.load %arg4[%c6_38, %c0_39] : memref<9x256xf32, #tpu.memory_space<vmem>>, vector<1x256xf32>
    %69 = vector.broadcast %68 : vector<1x256xf32> to vector<8x256xf32>
    %70 = arith.mulf %67, %69 : vector<8x256xf32>
    %c240_i32_40 = arith.constant 240 : i32
    %71 = tpu.dynamic_rotate %46 by %c240_i32_40 dim 1 : vector<8x256xf32>, i32 -> vector<8x256xf32>
    %c7_41 = arith.constant 7 : index
    %c0_42 = arith.constant 0 : index
    %72 = vector.load %arg4[%c7_41, %c0_42] : memref<9x256xf32, #tpu.memory_space<vmem>>, vector<1x256xf32>
    %73 = vector.broadcast %72 : vector<1x256xf32> to vector<8x256xf32>
    %74 = arith.mulf %71, %73 : vector<8x256xf32>
    %c239_i32_43 = arith.constant 239 : i32
    %75 = tpu.dynamic_rotate %46 by %c239_i32_43 dim 1 : vector<8x256xf32>, i32 -> vector<8x256xf32>
    %c8_44 = arith.constant 8 : index
    %c0_45 = arith.constant 0 : index
    %76 = vector.load %arg4[%c8_44, %c0_45] : memref<9x256xf32, #tpu.memory_space<vmem>>, vector<1x256xf32>
    %77 = vector.broadcast %76 : vector<1x256xf32> to vector<8x256xf32>
    %78 = arith.mulf %75, %77 : vector<8x256xf32>
    %79 = tpu.concatenate %50, %54, %58, %62, %46, %66, %70, %74, %78 in 0 : vector<8x256xf32>, vector<8x256xf32>, vector<8x256xf32>, vector<8x256xf32>, vector<8x256xf32>, vector<8x256xf32>, vector<8x256xf32>, vector<8x256xf32>, vector<8x256xf32> -> vector<72x256xf32>
    %cst_46 = arith.constant dense<0.000000e+00> : vector<8x256xf32>
    %80 = tpu.matmul %0, %79, %cst_46 {dimension_numbers = #tpu.dot_dimension_numbers<[1], [0], [0], [1], [0, 0, 1, 1], [], []>} : vector<8x72xf32>, vector<72x256xf32>, vector<8x256xf32> -> vector<8x256xf32>
    %81 = vector.broadcast %1 : vector<8x1xf32> to vector<8x256xf32>
    %82 = arith.addf %80, %81 : vector<8x256xf32>
    %cst_47 = arith.constant 0.000000e+00 : f32
    %83 = vector.broadcast %cst_47 : f32 to vector<8x256xf32>
    %84 = arith.maximumf %82, %83 : vector<8x256xf32>
    %c1_48 = arith.constant 1 : index
    %c0_49 = arith.constant 0 : index
    %c0_50 = arith.constant 0 : index
    %85 = vector.load %arg5[%c1_48, %c0_49, %c0_50] : memref<2x8x256xf32, #tpu.memory_space<vmem>>, vector<1x8x256xf32>
    %86 = vector.shape_cast %85 : vector<1x8x256xf32> to vector<8x256xf32>
    %87 = vector.shape_cast %84 : vector<8x256xf32> to vector<1x8x256xf32>
    tpu.vector_store %arg5[%c1_48, %c0_49, %c0_50], %87 {strides = array<i32>} : memref<2x8x256xf32, #tpu.memory_space<vmem>>, vector<1x8x256xf32>,
    return
  }
  func.func @transform_0(%arg0: i32) -> (i32, i32, i32) {
    %c0_i32 = arith.constant 0 : i32
    %c0_i32_0 = arith.constant 0 : i32
    %c0_i32_1 = arith.constant 0 : i32
    return %arg0, %c0_i32, %c0_i32_0 : i32, i32, i32
  }
  func.func @transform_1(%arg0: i32) -> (i32, i32) {
    %c0_i32 = arith.constant 0 : i32
    %c0_i32_0 = arith.constant 0 : i32
    %c0_i32_1 = arith.constant 0 : i32
    return %c0_i32, %c0_i32_0 : i32, i32
  }
  func.func @transform_2(%arg0: i32) -> (i32, i32) {
    %c0_i32 = arith.constant 0 : i32
    %c0_i32_0 = arith.constant 0 : i32
    %c0_i32_1 = arith.constant 0 : i32
    return %c0_i32, %c0_i32_0 : i32, i32
  }
  func.func @transform_3(%arg0: i32) -> (i32, i32) {
    %c0_i32 = arith.constant 0 : i32
    %c0_i32_0 = arith.constant 0 : i32
    %c0_i32_1 = arith.constant 0 : i32
    return %c0_i32, %c0_i32_0 : i32, i32
  }
  func.func @transform_4(%arg0: i32) -> (i32, i32, i32) {
    %c0_i32 = arith.constant 0 : i32
    %c0_i32_0 = arith.constant 0 : i32
    %c0_i32_1 = arith.constant 0 : i32
    return %arg0, %c0_i32, %c0_i32_0 : i32, i32, i32
  }
}

</mosaic_0001>

<bundles_post_ra>
// kernel: tpu_custom_call.1
= control target key start
LH: loop header
LB: loop body
LE: loop exit
PB: predicated region body
PF: predicated region fallthrough
CT: control target
= control target key end

     0   :  { %9 = vsyncpa [#allocation3], 0  ;;  %s937_s0 = inlined_call_operand.hbm [shape: f32[2,8,256], index: 0, kind: input, shape index: {}]   ;;  %s938_s1 = inlined_call_operand.vmem [shape: f32[8,72], index: 1, kind: input, shape index: {}]   ;;  %s939_s2 = inlined_call_operand.vmem [shape: f32[8,1], index: 2, kind: input, shape index: {}]   ;;  %s940_s3 = inlined_call_operand.hbm [shape: f32[9,256], index: 3, kind: input, shape index: {}]   ;;  %s941_s4 = inlined_call_operand.hbm [shape: f32[2,8,256], index: 4, kind: output, shape index: {}]  }
   0x1   :  { %10 = vsyncpa [#allocation6], 0 }
   0x2   :  { %11 = vsyncpa [#allocation4], 0  ;;  %s689_s15 = smov [#allocation2]   ;;  %s617_s19 = scalar_lea.hbm %s937_s0, 512 }
   0x3   :  { %s17_s16 = sshll.u32 %s689_s15, 4  ;;  %p618_p0 = scmp.ne.s32.totalorder %s937_s0, %s617_s19  ;;  %s18_s16 = int_to_ptr.vmem [resolvable:$true] %s17_s16 }
   0x4   :  { %p621_p1 = scmp.lt.u32.totalorder %s617_s19, %s937_s0 }
   0x6   :  { %p623_p2 = pnand %p621_p1, %p618_p0 }
   0x8   :  { %626 = shalt.err (!%p623_p2)
}
   0x9   :  { %s627_s24 = scalar_lea.vmem %s18_s16, 512  ;;  %p632_p4 = scmp.lt.s32.totalorder %s18_s16, %s18_s16 }
   0xa   :  { %p628_p3 = scmp.ne.s32.totalorder %s18_s16, %s627_s24  ;;  %p633_p5 = scmp.lt.s32.totalorder %s627_s24, %s627_s24 }
   0xc   :  { %p634_p6 = por %p633_p5, %p632_p4 }
   0xe   :  { %p635_p7 = pnand %p634_p6, %p628_p3 }
  0x10   :  { %638 = shalt.err (!%p635_p7)
}
  0x11   :  { %s690_s25 = smov 256   ;;  %s691_s26 = smov 16  }
  0x12   :  { %23 = dma.hbm_to_vmem [thread:$0]  %s937_s0, 512, %s18_s16, [#allocation3], %s690_s25, %s690_s25, %s691_s26  }
  0x13   :  { %s692_s29 = smov [#allocation5]   ;;  %s639_s7 = scalar_lea.hbm %s940_s3, 512 }
  0x14   :  { %s33_s30 = sshll.u32 %s692_s29, 4  ;;  %p640_p8 = scmp.ne.s32.totalorder %s940_s3, %s639_s7  ;;  %s34_s30 = int_to_ptr.vmem [resolvable:$true] %s33_s30 }
  0x15   :  { %p643_p9 = scmp.lt.u32.totalorder %s639_s7, %s940_s3 }
  0x17   :  { %p645_p10 = pnand %p643_p9, %p640_p8 }
  0x19   :  { %648 = shalt.err (!%p645_p10)
}
  0x1a   :  { %s649_s12 = scalar_lea.vmem %s34_s30, 512  ;;  %p654_p12 = scmp.lt.s32.totalorder %s34_s30, %s34_s30 }
  0x1b   :  { %p650_p11 = scmp.ne.s32.totalorder %s34_s30, %s649_s12  ;;  %p655_p13 = scmp.lt.s32.totalorder %s649_s12, %s649_s12 }
  0x1d   :  { %p656_p0 = por %p655_p13, %p654_p12 }
  0x1f   :  { %p657_p1 = pnand %p656_p0, %p650_p11 }
  0x21   :  { %660 = shalt.err (!%p657_p1)
}
  0x22   :  { %39 = dma.hbm_to_vmem [thread:$0]  %s940_s3, 512, %s34_s30, [#allocation6], %s690_s25, %s690_s25, %s691_s26  }
  0x23   :  { %683 = dma.done.wait [#allocation3], 512  }
  0x24   :  { %684 = vsyncadd [#allocation3], 4294966784 }
  0x25   :  { %685 = dma.done.wait [#allocation6], 512  }
  0x26   :  { %686 = vsyncadd [#allocation6], 4294966784  ;;  %v758_v0 = vld [vmem:[#allocation2] sm:$0xff]  ;;  %s693_s14 = smov 17   ;;  %v763_v1 = vld [vmem:[#allocation2 + $0x8] sm:$0xff]  ;;  %s694_s3 = smov 15   ;;  %v54_v7 = vlaneseq }
  0x27   :  { %73 = vrot.lane.b32.xlu1 %v758_v0, %s691_s26  ;;  %50 = vrot.lane.b32.xlu0 %v758_v0, %s693_s14  ;;  %v768_v2 = vld [vmem:[#allocation2 + $0x18] sm:$0xff]  ;;  %v770_v3 = vld [vmem:[#allocation2 + $0x10] sm:$0xff]  ;;  %s695_s15 = smov 1   ;;  %s696_s16 = smov 127   ;;  %v699_v4 = vmov 0.0   ;;  %v700_v5 = vmov 0  }
  0x28   :  { %s697_s17 = smov 113   ;;  %s698_s18 = smov 112   ;;  %300 = vmatprep.mubr.f32.mxu0 %v699_v4  ;;  %538 = vmatprep.mubr.f32.mxu1 %v699_v4  ;;  %v47_v6 = vld [vmem:[%s939_s2] sm:$0xff]  ;;  %v62_v8 = vshrl.u32 %v54_v7, 7  ;;  %v805_v9 = vand.u32 127, %v54_v7  ;;  %vm232_vm8 = vcmask 588800  }
  0x29   :  { %616 = vset.pattern.permute.xlu0 %v700_v5  ;;  %s701_s19 = smov 111   ;;  %v81_v12 = vld [vmem:[#allocation5 + $0x1] ss:$8 sm:$0x3] }
  0x2a   :  { %v807_v10 = vsub.s32 0, %v62_v8  ;;  %v809_v11 = vsub.s32 1, %v62_v8  ;;  %v59_v13 = vld [vmem:[#allocation5] ss:$8 sm:$0x3]  ;;  %vm77_vm0 = vcmp.lt.s32.totalorder %v805_v9, 16 }
  0x2b   :  { %75 = vrot.lane.b32.xlu1 %v763_v1, %s691_s26  ;;  %52 = vrot.lane.b32.xlu0 %v763_v1, %s693_s14  ;;  %vm56_vm1 = vcmp.lt.s32.totalorder %v805_v9, 17  ;;  %v320_v30 = vld [vmem:[#allocation5] ss:$8 sm:$0x3]  ;;  %vm99_vm2 = vcmp.lt.s32.totalorder %v805_v9, 15  ;;  %vm121_vm3 = vcmp.lt.s32.totalorder %v805_v9, 1 }
  0x2c   :  { %v86_v16 = vrot.slane %v81_v12, %v807_v10  ;;  %v64_v17 = vrot.slane %v59_v13, %v807_v10  ;;  %v68_v18 = vrot.slane %v59_v13, %v809_v11  ;;  %v90_v19 = vrot.slane %v81_v12, %v809_v11  ;;  %v340_v31 = vld [vmem:[#allocation5 + $0x1] ss:$8 sm:$0x3]  ;;  %v103_v48 = vld [vmem:[#allocation5 + $0x2] ss:$8 sm:$0x3] }
  0x2d   :  { %v325_v36 = vrot.slane %v320_v30, %v807_v10  ;;  %v345_v37 = vrot.slane %v340_v31, %v807_v10  ;;  %v329_v38 = vrot.slane %v320_v30, %v809_v11  ;;  %v349_v39 = vrot.slane %v340_v31, %v809_v11  ;;  %v125_v51 = vld [vmem:[#allocation5 + $0x3] ss:$8 sm:$0x3]  ;;  %v360_v13 = vld [vmem:[#allocation5 + $0x2] ss:$8 sm:$0x3] }
  0x2e   :  { %v108_v56 = vrot.slane %v103_v48, %v807_v10  ;;  %v112_v57 = vrot.slane %v103_v48, %v809_v11  ;;  %v130_v58 = vrot.slane %v125_v51, %v807_v10  ;;  %v134_v59 = vrot.slane %v125_v51, %v809_v11 }
  0x2f   :  { %316 = vrot.lane.b32.xlu1 %v768_v2, %s693_s14  ;;  %314 = vrot.lane.b32.xlu0 %v770_v3, %s693_s14  ;;  %vm143_vm4 = vcmp.lt.s32.totalorder %v805_v9, 127  ;;  %vm165_vm5 = vcmp.lt.s32.totalorder %v805_v9, 113  ;;  %vm187_vm6 = vcmp.lt.s32.totalorder %v805_v9, 112  ;;  %vm209_vm7 = vcmp.lt.s32.totalorder %v805_v9, 111 }
  0x33   :  { %336 = vrot.lane.b32.xlu1 %v768_v2, %s691_s26  ;;  %334 = vrot.lane.b32.xlu0 %v770_v3, %s691_s26 }
  0x37   :  { %97 = vrot.lane.b32.xlu1 %v763_v1, %s694_s3  ;;  %95 = vrot.lane.b32.xlu0 %v758_v0, %s694_s3 }
  0x3b   :  { %119 = vrot.lane.b32.xlu1 %v763_v1, %s695_s15  ;;  %117 = vrot.lane.b32.xlu0 %v758_v0, %s695_s15 }
  0x3f   :  { %356 = vrot.lane.b32.xlu1 %v768_v2, %s694_s3  ;;  %354 = vrot.lane.b32.xlu0 %v770_v3, %s694_s3 }
  0x43   :  { %376 = vrot.lane.b32.xlu1 %v768_v2, %s695_s15  ;;  %374 = vrot.lane.b32.xlu0 %v770_v3, %s695_s15 }
  0x47   :  { %141 = vrot.lane.b32.xlu1 %v763_v1, %s696_s16  ;;  %139 = vrot.lane.b32.xlu0 %v758_v0, %s696_s16 }
  0x4b   :  { %396 = vrot.lane.b32.xlu1 %v768_v2, %s696_s16  ;;  %394 = vrot.lane.b32.xlu0 %v770_v3, %s696_s16 }
  0x4f   :  { %163 = vrot.lane.b32.xlu1 %v763_v1, %s697_s17  ;;  %161 = vrot.lane.b32.xlu0 %v758_v0, %s697_s17 }
  0x53   :  { %185 = vrot.lane.b32.xlu1 %v763_v1, %s698_s18  ;;  %183 = vrot.lane.b32.xlu0 %v758_v0, %s698_s18 }
  0x57   :  { %416 = vrot.lane.b32.xlu1 %v768_v2, %s697_s17  ;;  %414 = vrot.lane.b32.xlu0 %v770_v3, %s697_s17 }
  0x5b   :  { %436 = vrot.lane.b32.xlu1 %v768_v2, %s698_s18  ;;  %434 = vrot.lane.b32.xlu0 %v770_v3, %s698_s18 }
  0x5f   :  { %207 = vrot.lane.b32.xlu1 %v763_v1, %s701_s19  ;;  %205 = vrot.lane.b32.xlu0 %v758_v0, %s701_s19 }
  0x63   :  { %456 = vrot.lane.b32.xlu1 %v768_v2, %s701_s19  ;;  %454 = vrot.lane.b32.xlu0 %v770_v3, %s701_s19 }
  0x67   :  { %229 = vperm.xlu0 %616, %v47_v6  }
  0x99   :  { %v74_v14 = vpop.permute.xlu1 %73  ;;  %v51_v15 = vpop.permute.xlu0 %50 }
  0x9d   :  { %v76_v20 = vpop.permute.xlu1 %75  ;;  %v53_v21 = vpop.permute.xlu0 %52 }
  0x9e   :  { %v78_v22 = vsel %vm77_vm0, %v74_v14, %v76_v20  ;;  %v79_v23 = vsel %vm77_vm0, %v76_v20, %v74_v14  ;;  %v57_v24 = vsel %vm56_vm1, %v51_v15, %v53_v21  ;;  %v58_v25 = vsel %vm56_vm1, %v53_v21, %v51_v15  ;;  %v380_v14 = vld [vmem:[#allocation5 + $0x3] ss:$8 sm:$0x3] }
  0x9f   :  { %v93_v26 = vmul.f32 %v86_v16, %v79_v23  ;;  %v71_v27 = vmul.f32 %v64_v17, %v58_v25  ;;  %v72_v28 = vmul.f32 %v68_v18, %v57_v24  ;;  %v94_v29 = vmul.f32 %v90_v19, %v78_v22  ;;  %v147_v23 = vld [vmem:[#allocation5 + $0x5] ss:$8 sm:$0x3] }
  0xa0   :  { %v365_v19 = vrot.slane %v360_v13, %v807_v10  ;;  %v369_v20 = vrot.slane %v360_v13, %v809_v11  ;;  %v385_v21 = vrot.slane %v380_v14, %v807_v10  ;;  %v389_v22 = vrot.slane %v380_v14, %v809_v11  ;;  %v420_v14 = vld [vmem:[#allocation5 + $0x6] ss:$8 sm:$0x3] }
  0xa1   :  { %v317_v32 = vpop.permute.xlu1 %316  ;;  %v315_v33 = vpop.permute.xlu0 %314  ;;  %v570_v34 = vpack.c.bf16 %v94_v29, %v72_v28  ;;  %v572_v35 = vpack.c.bf16 %v93_v26, %v71_v27  ;;  %v152_v30 = vrot.slane %v147_v23, %v807_v10  ;;  %v156_v31 = vrot.slane %v147_v23, %v809_v11 }
  0xa2   :  { %v318_v40 = vsel %vm56_vm1, %v315_v33, %v317_v32  ;;  %v319_v41 = vsel %vm56_vm1, %v317_v32, %v315_v33 }
  0xa3   :  { %571 = vmatprep.subr.bf16.mxu0 %v570_v34  ;;  %v332_v46 = vmul.f32 %v325_v36, %v319_v41  ;;  %v333_v49 = vmul.f32 %v329_v38, %v318_v40  ;;  %v400_v36 = vld [vmem:[#allocation5 + $0x5] ss:$8 sm:$0x3] }
  0xa4   :  { %573 = vmatpush1.bf16.msra.mxu0 %v572_v35 }
  0xa5   :  { %v337_v42 = vpop.permute.xlu1 %336  ;;  %v335_v43 = vpop.permute.xlu0 %334 }
  0xa6   :  { %v338_v44 = vsel %vm77_vm0, %v335_v43, %v337_v42  ;;  %v339_v45 = vsel %vm77_vm0, %v337_v42, %v335_v43 }
  0xa7   :  { %v352_v47 = vmul.f32 %v345_v37, %v339_v45  ;;  %v353_v50 = vmul.f32 %v349_v39, %v338_v44  ;;  %v405_v45 = vrot.slane %v400_v36, %v807_v10 }
  0xa9   :  { %v98_v52 = vpop.permute.xlu1 %97  ;;  %v96_v53 = vpop.permute.xlu0 %95  ;;  %v586_v54 = vpack.c.bf16 %v353_v50, %v333_v49  ;;  %v588_v55 = vpack.c.bf16 %v352_v47, %v332_v46  ;;  %v409_v46 = vrot.slane %v400_v36, %v809_v11 }
  0xaa   :  { %v100_v60 = vsel %vm99_vm2, %v96_v53, %v98_v52  ;;  %v101_v61 = vsel %vm99_vm2, %v98_v52, %v96_v53 }
  0xab   :  { %587 = vmatprep.subr.bf16.mxu1 %v586_v54  ;;  %v115_v6 = vmul.f32 %v108_v56, %v101_v61  ;;  %v116_v7 = vmul.f32 %v112_v57, %v100_v60  ;;  %v191_v56 = vld [vmem:[#allocation5 + $0x7] ss:$8 sm:$0x3] }
  0xac   :  { %589 = vmatpush1.bf16.msra.mxu1 %v588_v55  ;;  %v169_v55 = vld [vmem:[#allocation5 + $0x6] ss:$8 sm:$0x3]  ;;  %v196_v61 = vrot.slane %v191_v56, %v807_v10 }
  0xad   :  { %v120_v62 = vpop.permute.xlu1 %119  ;;  %v118_v63 = vpop.permute.xlu0 %117  ;;  %v178_v60 = vrot.slane %v169_v55, %v809_v11 }
  0xae   :  { %v122_v4 = vsel %vm121_vm3, %v118_v63, %v120_v62  ;;  %v123_v5 = vsel %vm121_vm3, %v120_v62, %v118_v63  ;;  %v200_v62 = vrot.slane %v191_v56, %v809_v11 }
  0xaf   :  { %v137_v8 = vmul.f32 %v130_v58, %v123_v5  ;;  %v138_v12 = vmul.f32 %v134_v59, %v122_v4  ;;  %v174_v59 = vrot.slane %v169_v55, %v807_v10 }
  0xb1   :  { %v357_v15 = vpop.permute.xlu1 %356  ;;  %v355_v16 = vpop.permute.xlu0 %354  ;;  %v574_v17 = vpack.c.bf16 %v138_v12, %v116_v7  ;;  %v576_v18 = vpack.c.bf16 %v137_v8, %v115_v6 }
  0xb2   :  { %v358_v24 = vsel %vm99_vm2, %v355_v16, %v357_v15  ;;  %v359_v25 = vsel %vm99_vm2, %v357_v15, %v355_v16  ;;  %v440_v15 = vld [vmem:[#allocation5 + $0x7] ss:$8 sm:$0x3] }
  0xb3   :  { %575 = vmatprep.subr.bf16.mxu0 %v574_v17  ;;  %v372_v32 = vmul.f32 %v365_v19, %v359_v25  ;;  %v373_v33 = vmul.f32 %v369_v20, %v358_v24  ;;  %v425_v20 = vrot.slane %v420_v14, %v807_v10  ;;  %v449_v23 = vrot.slane %v440_v15, %v809_v11  ;;  %v213_v24 = vld [vmem:[#allocation5 + $0x10] ss:$8 sm:$0x3] }
  0xb4   :  { %577 = vmatpush1.bf16.msra.mxu0 %v576_v18 }
  0xb5   :  { %v377_v26 = vpop.permute.xlu1 %376  ;;  %v375_v27 = vpop.permute.xlu0 %374 }
  0xb6   :  { %v378_v28 = vsel %vm121_vm3, %v375_v27, %v377_v26  ;;  %v379_v29 = vsel %vm121_vm3, %v377_v26, %v375_v27 }
  0xb7   :  { %v392_v34 = vmul.f32 %v385_v21, %v379_v29  ;;  %v393_v35 = vmul.f32 %v389_v22, %v378_v28  ;;  %v429_v21 = vrot.slane %v420_v14, %v809_v11  ;;  %v445_v22 = vrot.slane %v440_v15, %v807_v10 }
  0xb9   :  { %v142_v37 = vpop.permute.xlu1 %141  ;;  %v140_v38 = vpop.permute.xlu0 %139  ;;  %v590_v39 = vpack.c.bf16 %v393_v35, %v373_v33  ;;  %v592_v40 = vpack.c.bf16 %v392_v34, %v372_v32  ;;  %v222_v32 = vrot.slane %v213_v24, %v809_v11 }
  0xba   :  { %v144_v41 = vsel %vm143_vm4, %v140_v38, %v142_v37  ;;  %v145_v42 = vsel %vm143_vm4, %v142_v37, %v140_v38  ;;  %v460_v37 = vld [vmem:[#allocation5 + $0x10] ss:$8 sm:$0x3] }
  0xbb   :  { %v159_v43 = vmul.f32 %v152_v30, %v144_v41  ;;  %v160_v44 = vmul.f32 %v156_v31, %v145_v42  ;;  %591 = vmatprep.subr.bf16.mxu1 %v590_v39  ;;  %v218_v31 = vrot.slane %v213_v24, %v807_v10 }
  0xbc   :  { %593 = vmatpush1.bf16.msra.mxu1 %v592_v40 }
  0xbd   :  { %v397_v47 = vpop.permute.xlu1 %396  ;;  %v395_v48 = vpop.permute.xlu0 %394  ;;  %v578_v49 = vpack.c.bf16 %v160_v44, %v763_v1  ;;  %v580_v50 = vpack.c.bf16 %v159_v43, %v758_v0 }
  0xbe   :  { %v398_v51 = vsel %vm143_vm4, %v395_v48, %v397_v47  ;;  %v399_v52 = vsel %vm143_vm4, %v397_v47, %v395_v48  ;;  %v469_v47 = vrot.slane %v460_v37, %v809_v11  ;;  %v46_v48 = vld [vmem:[%s938_s1] sm:$0xff]  ;;  %s702_s1 = smov [#allocation7]  }
  0xbf   :  { %v412_v53 = vmul.f32 %v405_v45, %v398_v51  ;;  %v413_v54 = vmul.f32 %v409_v46, %v399_v52  ;;  %579 = vmatprep.subr.bf16.mxu0 %v578_v49  ;;  %v465_v46 = vrot.slane %v460_v37, %v807_v10  ;;  %s555_s23 = sshll.u32 %s702_s1, 4  ;;  %s556_s23 = int_to_ptr.vmem [resolvable:$true] %s555_s23 }
  0xc0   :  { %581 = vmatpush1.bf16.msra.mxu0 %v580_v50  ;;  %s661_s24 = scalar_lea.vmem %s556_s23, 512  ;;  %p666_p3 = scmp.lt.s32.totalorder %s556_s23, %s556_s23 }
  0xc1   :  { %v164_v57 = vpop.permute.xlu1 %163  ;;  %v162_v58 = vpop.permute.xlu0 %161  ;;  %v594_v1 = vpack.c.bf16 %v413_v54, %v768_v2  ;;  %v596_v0 = vpack.c.bf16 %v412_v53, %v770_v3  ;;  %p662_p2 = scmp.ne.s32.totalorder %s556_s23, %s661_s24  ;;  %p667_p4 = scmp.lt.s32.totalorder %s661_s24, %s661_s24 }
  0xc2   :  { %v166_v63 = vsel %vm165_vm5, %v162_v58, %v164_v57  ;;  %v167_v4 = vsel %vm165_vm5, %v164_v57, %v162_v58 }
  0xc3   :  { %595 = vmatprep.subr.bf16.mxu1 %v594_v1  ;;  %v181_v7 = vmul.f32 %v174_v59, %v166_v63  ;;  %v182_v8 = vmul.f32 %v178_v60, %v167_v4  ;;  %p668_p5 = por %p667_p4, %p666_p3 }
  0xc4   :  { %597 = vmatpush1.bf16.msra.mxu1 %v596_v0 }
  0xc5   :  { %v186_v2 = vpop.permute.xlu1 %185  ;;  %v184_v3 = vpop.permute.xlu0 %183  ;;  %p669_p6 = pnand %p668_p5, %p662_p2 }
  0xc6   :  { %v188_v5 = vsel %vm187_vm6, %v184_v3, %v186_v2  ;;  %v189_v6 = vsel %vm187_vm6, %v186_v2, %v184_v3 }
  0xc7   :  { %v203_v12 = vmul.f32 %v196_v61, %v188_v5  ;;  %v204_v13 = vmul.f32 %v200_v62, %v189_v6 }
  0xc9   :  { %v417_v16 = vpop.permute.xlu1 %416  ;;  %v415_v17 = vpop.permute.xlu0 %414  ;;  %v582_v18 = vpack.c.bf16 %v204_v13, %v182_v8  ;;  %v584_v19 = vpack.c.bf16 %v203_v12, %v181_v7 }
  0xca   :  { %v418_v25 = vsel %vm165_vm5, %v415_v17, %v417_v16  ;;  %v419_v26 = vsel %vm165_vm5, %v417_v16, %v415_v17 }
  0xcb   :  { %583 = vmatprep.subr.bf16.mxu0 %v582_v18  ;;  %v432_v33 = vmul.f32 %v425_v20, %v418_v25  ;;  %v433_v34 = vmul.f32 %v429_v21, %v419_v26 }
  0xcc   :  { %585 = vmatpush1.bf16.msra.mxu0 %v584_v19 }
  0xcd   :  { %v437_v27 = vpop.permute.xlu1 %436  ;;  %v435_v28 = vpop.permute.xlu0 %434 }
  0xce   :  { %v438_v29 = vsel %vm187_vm6, %v435_v28, %v437_v27  ;;  %v439_v30 = vsel %vm187_vm6, %v437_v27, %v435_v28 }
  0xcf   :  { %v452_v35 = vmul.f32 %v445_v22, %v438_v29  ;;  %v453_v36 = vmul.f32 %v449_v23, %v439_v30 }
  0xd1   :  { %v208_v38 = vpop.permute.xlu1 %207  ;;  %v206_v39 = vpop.permute.xlu0 %205  ;;  %v598_v40 = vpack.c.bf16 %v453_v36, %v433_v34  ;;  %v600_v41 = vpack.c.bf16 %v452_v35, %v432_v33 }
  0xd2   :  { %v210_v42 = vsel %vm209_vm7, %v206_v39, %v208_v38  ;;  %v211_v43 = vsel %vm209_vm7, %v208_v38, %v206_v39 }
  0xd3   :  { %v225_v44 = vmul.f32 %v218_v31, %v210_v42  ;;  %v226_v45 = vmul.f32 %v222_v32, %v211_v43  ;;  %599 = vmatprep.subr.bf16.mxu1 %v598_v40 }
  0xd4   :  { %601 = vmatpush1.bf16.msra.mxu1 %v600_v41 }
  0xd5   :  { %v457_v49 = vpop.permute.xlu1 %456  ;;  %252 = vmatprep.subr.mxu0 %v226_v45  ;;  %v455_v50 = vpop.permute.xlu0 %454 }
  0xd6   :  { %v458_v51 = vsel %vm209_vm7, %v455_v50, %v457_v49  ;;  %v459_v52 = vsel %vm209_vm7, %v457_v49, %v455_v50  ;;  %253 = vmatpush1.msra.mxu0 %v225_v44 }
  0xd7   :  { %v472_v53 = vmul.f32 %v465_v46, %v458_v51  ;;  %v473_v10 = vmul.f32 %v469_v47, %v459_v52  ;;  %568 = vmatmul.mubr.msk.f32.vlgmr.msra.gmra.mrb[0].mxu0 %vm232_vm8, %v46_v48 }
  0xd9   :  { %490 = vmatprep.subr.mxu1 %v473_v10 }
  0xda   :  { %491 = vmatpush1.msra.mxu1 %v472_v53 }
  0xdb   :  { %569 = vmatmul.mubr.msk.f32.vlgmr.msra.gmra.mrb[0].mxu1 %vm232_vm8, %v46_v48 }
  0xe6   :  { %v230_v11 = vpop.permute.xlu0 %229 }
 0x1aa   :  { %v302_v54 = vpop.f32.mrb[0].mxu0 }
 0x1ab   :  { %v303_v55 = vadd.f32 %v302_v54, %v230_v11  ;;  %v304_v56 = vpop.f32.mrb[1].mxu0 }
 0x1ac   :  { %v305_v57 = vadd.f32 %v304_v56, %v230_v11 }
 0x1ad   :  { %v307_v58 = vmax.f32 %v303_v55, 0.0 }
 0x1ae   :  { %v308_v1 = vmax.f32 %v305_v57, 0.0  ;;  %v540_v0 = vpop.f32.mrb[0].mxu1 }
 0x1af   :  { %309 = vst [vmem:[#allocation7] sm:$0xff] %v307_v58  ;;  %v541_v59 = vadd.f32 %v540_v0, %v230_v11  ;;  %v542_v60 = vpop.f32.mrb[1].mxu1 }
 0x1b0   :  { %310 = vst [vmem:[#allocation7 + $0x8] sm:$0xff] %v308_v1  ;;  %v543_v9 = vadd.f32 %v542_v60, %v230_v11 }
 0x1b1   :  { %v545_v61 = vmax.f32 %v541_v59, 0.0 }
 0x1b2   :  { %v546_v62 = vmax.f32 %v543_v9, 0.0 }
 0x1b3   :  { %548 = vst [vmem:[#allocation7 + $0x10] sm:$0xff] %v545_v61 }
 0x1b4   :  { %549 = vst [vmem:[#allocation7 + $0x18] sm:$0xff] %v546_v62 }
 0x1b5   :  { %672 = shalt.err (!%p669_p6)
}
 0x1b6   :  { %s673_s29 = scalar_lea.hbm %s941_s4, 512 }
 0x1b7   :  { %p674_p7 = scmp.ne.s32.totalorder %s941_s4, %s673_s29  ;;  %p677_p8 = scmp.lt.u32.totalorder %s673_s29, %s941_s4 }
 0x1b9   :  { %p679_p9 = pnand %p677_p8, %p674_p7 }
 0x1bb   :  { %682 = shalt.err (!%p679_p9)
}
 0x1bc   :  { %561 = dma.vmem_to_hbm [thread:$0]  %s556_s23, 512, %s941_s4, [#allocation4], %s690_s25, %s690_s25, %s691_s26  }
 0x1bd   :  { %687 = dma.done.wait [#allocation4], 512  }
 0x1be   :  { %688 = vsyncadd [#allocation4], 4294966784 }
 0x1bf   :  { %565 = vsyncpa [#allocation3], 1 }
 0x1c0   :  { %566 = vsyncpa [#allocation6], 1 }
 0x1c1   :  { %567 = vsyncpa [#allocation4], 1 }

</bundles_post_ra>
